<compile_context>
chip_gen: v5e
topology: v5e:2x2
jax: 0.10.0
libtpu: 0.0.40
codegen_flags: <defaults>
</compile_context>

<pallas_src>
import functools

import jax
import jax.numpy as jnp
import numpy as np
from jax.experimental import pallas as pl
from jax.experimental.pallas import tpu as pltpu

LRELU_SLOPE = 0.1


def get_padding(kernel_size, dilation=1):
    return (kernel_size * dilation - dilation) // 2


def _round_up(x, m):
    return ((x + m - 1) // m) * m


# ----------------------------- Pallas kernel ------------------------------ #
def _matmul_bias_act_kernel(x_ref, w_ref, b_ref, o_ref, *, apply_lrelu):
    """One (TM, Kc) x (Kc, TN) MXU matmul tile + bias + optional leaky-ReLU.

    x_ref: (TM, Kc)  bf16 im2col rows        (pipelined over the row grid axis)
    w_ref: (Kc, TN)  bf16 weight column tile (constant block over the row axis)
    b_ref: (1,  TN)  f32 bias tile
    o_ref: (TM, TN)  f32 output tile (TN is a multiple of 128 -> lane-dense)
    """
    y = jnp.dot(x_ref[...], w_ref[...], preferred_element_type=jnp.float32)
    y = y + b_ref[...]
    if apply_lrelu:
        y = jnp.where(y >= 0.0, y, LRELU_SLOPE * y)
    o_ref[...] = y.astype(o_ref.dtype)


def conv2d_k1_pallas(x, w_oihw, bias, stride, apply_lrelu):
    """Conv2d with kernel (K,1)/stride (S,1) on x of layout (N, H, C_in).

    x:      (N, H, C_in) float32
    w_oihw: (C_out, C_in, K, 1)  (PyTorch layout)
    bias:   (C_out,)
    returns (N, H_out, C_out) float32
    """
    C_out, C_in, K, _ = w_oihw.shape
    pad = get_padding(K)
    N, H, _ = x.shape

    # bf16 activations for the MXU; zero-pad along H.
    x_bf = x.astype(jnp.bfloat16)
    x_pad = jnp.pad(x_bf, ((0, 0), (pad, pad), (0, 0)))
    H_pad = H + 2 * pad
    H_out = (H_pad - K) // stride + 1

    # im2col in the wrapper: K (strided) tap views -> (N, H_out, K*C_in) -> (R, Kc)
    taps = [
        jax.lax.slice(
            x_pad,
            (0, k, 0),
            (N, k + (H_out - 1) * stride + 1, C_in),
            (1, stride, 1),
        )
        for k in range(K)
    ]
    cols = jnp.concatenate(taps, axis=-1).reshape(N * H_out, K * C_in)

    R, Kc = cols.shape
    Kc_pad = _round_up(Kc, 128)            # lane-aligned contraction dim
    Cp = _round_up(C_out, 128)             # lane-dense output channels
    TM = min(256, _round_up(R, 16))        # row tile (MXU M), 16-aligned for bf16
    TN = min(256, Cp)                      # output-channel tile (MXU N)
    R_pad = _round_up(R, TM)

    cols = jnp.pad(cols, ((0, R_pad - R), (0, Kc_pad - Kc)))

    # (C_out, C_in, K) -> (K, C_in, C_out) -> (K*C_in, C_out), bf16, zero-padded.
    w = jnp.transpose(w_oihw[:, :, :, 0], (2, 1, 0)).reshape(Kc, C_out)
    w = jnp.pad(w.astype(jnp.bfloat16), ((0, Kc_pad - Kc), (0, Cp - C_out)))
    b = jnp.pad(bias.astype(jnp.float32), (0, Cp - C_out)).reshape(1, Cp)

    # Rows are the innermost grid axis so the weight/bias column tiles keep the
    # same block index across it (fetched once per output-channel tile).
    grid = (Cp // TN, R_pad // TM)

    # Per-layer VMEM budget: double-buffered x/w/bias/out tiles + margin.
    vmem_bytes = 2 * (TM * Kc_pad * 2 + Kc_pad * TN * 2 + TN * 4 + TM * TN * 4)
    vmem_limit = min(max(int(vmem_bytes * 1.5) + (2 << 20), 16 << 20), 64 << 20)

    flops = 2 * R_pad * Kc_pad * Cp
    bytes_accessed = cols.size * 2 + w.size * 2 + b.size * 4 + R_pad * Cp * 4

    out = pl.pallas_call(
        functools.partial(_matmul_bias_act_kernel, apply_lrelu=apply_lrelu),
        out_shape=jax.ShapeDtypeStruct((R_pad, Cp), jnp.float32),
        grid=grid,
        in_specs=[
            pl.BlockSpec((TM, Kc_pad), lambda j, i: (i, 0)),   # im2col rows
            pl.BlockSpec((Kc_pad, TN), lambda j, i: (0, j)),   # weight columns
            pl.BlockSpec((1, TN), lambda j, i: (0, j)),        # bias
        ],
        out_specs=pl.BlockSpec((TM, TN), lambda j, i: (i, j)),
        compiler_params=pltpu.CompilerParams(
            dimension_semantics=("parallel", "parallel"),
            vmem_limit_bytes=vmem_limit,
        ),
        cost_estimate=pl.CostEstimate(
            flops=flops, transcendentals=0, bytes_accessed=bytes_accessed
        ),
    )(cols, w, b)

    return out[:R, :C_out].reshape(N, H_out, C_out)


# --------------------------- forward (wrapper) ----------------------------- #
def discriminator_p_forward(x, params, period):
    """x: (B, 1, T) float32, same as the PyTorch module input (b, c, t)."""
    B, C, T = x.shape
    if T % period != 0:
        n_pad = period - T % period
        x = jnp.pad(x, ((0, 0), (0, 0), (0, n_pad)), mode="reflect")
        T = T + n_pad
    H, W = T // period, period
    x_nchw = x.reshape(B, C, H, W)
    # NCHW -> (N = B*W, H, C); the chain stays in this layout between layers.
    xk = jnp.transpose(x_nchw, (0, 3, 2, 1)).reshape(B * W, H, C)

    fmap = []
    n_layers = len(params)
    for i, (w, b, stride) in enumerate(params):
        is_post = i == n_layers - 1
        xk = conv2d_k1_pallas(xk, w, b, stride, apply_lrelu=not is_post)
        Ci, Hi = w.shape[0], xk.shape[1]
        # NCHW fmap only at the output boundary (required by the module's API).
        fmap.append(jnp.transpose(xk.reshape(B, W, Hi, Ci), (0, 3, 2, 1)))

    out = fmap[-1].reshape(B, -1)  # torch.flatten(x, 1, -1)
    return out, fmap


# ------------------------- deterministic parameters ------------------------ #
def init_params(key, kernel_size=5, stride=3):
    chs = [(1, 32), (32, 64), (64, 128), (128, 256), (256, 512), (512, 1024),
           (1024, 1024)]
    params = []
    for i, (ci, co) in enumerate(chs):
        key, kw, kb = jax.random.split(key, 3)
        s = stride if i < 6 else 1  # last conv in self.convs has stride 1
        w = jax.random.normal(kw, (co, ci, kernel_size, 1), jnp.float32) / np.sqrt(
            ci * kernel_size
        )
        b = jax.random.normal(kb, (co,), jnp.float32) * 0.01
        params.append((w, b, s))
    # conv_post: Conv2d(1024, 1, (3, 1), 1, padding=(1, 0))
    key, kw, kb = jax.random.split(key, 3)
    w = jax.random.normal(kw, (1, 1024, 3, 1), jnp.float32) / np.sqrt(1024 * 3)
    b = jax.random.normal(kb, (1,), jnp.float32) * 0.01
    params.append((w, b, 1))
    return params


# ------------------------------ JAX reference ------------------------------ #
def ref_forward(x, params, period):
    """Reference with the same compute precision as the kernel path:
    bf16 conv inputs / weights, f32 accumulation, f32 bias + leaky-ReLU."""
    B, C, T = x.shape
    if T % period != 0:
        n_pad = period - T % period
        x = jnp.pad(x, ((0, 0), (0, 0), (0, n_pad)), mode="reflect")
        T = T + n_pad
    x = x.reshape(B, C, T // period, period)
    fmap = []
    n = len(params)
    for i, (w, b, stride) in enumerate(params):
        K = w.shape[2]
        pad = get_padding(K)
        xc = x.astype(jnp.bfloat16).astype(jnp.float32)
        wc = w.astype(jnp.bfloat16).astype(jnp.float32)
        x = jax.lax.conv_general_dilated(
            xc, wc, window_strides=(stride, 1), padding=[(pad, pad), (0, 0)],
            dimension_numbers=("NCHW", "OIHW", "NCHW"),
        )
        x = x + b[None, :, None, None]
        if i != n - 1:
            x = jnp.where(x >= 0.0, x, LRELU_SLOPE * x)
        fmap.append(x)
    return x.reshape(B, -1), fmap


# ----------------------------------- main ---------------------------------- #
if __name__ == "__main__":
    key = jax.random.PRNGKey(0)
    key, kx, kp = jax.random.split(key, 3)

    B, T = 2, 47          # small seq; t % period != 0 exercises the reflect pad
    period = 4
    x = jax.random.normal(kx, (B, 1, T), jnp.float32)
    params = init_params(kp)

    out, fmap = discriminator_p_forward(x, params, period)
    out = jax.block_until_ready(out)
    fmap = [jax.block_until_ready(f) for f in fmap]

    out_ref, fmap_ref = ref_forward(x, params, period)
    assert out.shape == out_ref.shape, (out.shape, out_ref.shape)
    np.testing.assert_allclose(np.asarray(out), np.asarray(out_ref),
                               rtol=2e-2, atol=2e-2)
    for a, b in zip(fmap, fmap_ref):
        assert a.shape == b.shape, (a.shape, b.shape)
        np.testing.assert_allclose(np.asarray(a), np.asarray(b),
                                   rtol=2e-2, atol=2e-2)

    print("KERNEL_OK")
</pallas_src>

<mosaic_0001>
module attributes {stable_mosaic.version = 11 : i64} {
  func.func @_matmul_bias_act_kernel(%arg0: i32, %arg1: i32, %arg2: memref<32x128xbf16, #tpu.memory_space<vmem>>, %arg3: memref<128x128xbf16, #tpu.memory_space<vmem>>, %arg4: memref<1x128xf32, #tpu.memory_space<vmem>>, %arg5: memref<32x128xf32, #tpu.memory_space<vmem>>) attributes {dimension_semantics = [#tpu.dimension_semantics<parallel>, #tpu.dimension_semantics<parallel>], iteration_bounds = array<i64: 1, 1>, scalar_prefetch = 0 : i64, scratch_operands = 0 : i64, tpu.core_type = #tpu.core_type<tc>, window_params = [{transform_indices = @transform_0, window_bounds = array<i64: 32, 128>}, {transform_indices = @transform_1, window_bounds = array<i64: 128, 128>}, {transform_indices = @transform_2, window_bounds = array<i64: 1, 128>}, {transform_indices = @transform_3, window_bounds = array<i64: 32, 128>}]} {
    %c0 = arith.constant 0 : index
    %c0_0 = arith.constant 0 : index
    %0 = vector.load %arg2[%c0, %c0_0] : memref<32x128xbf16, #tpu.memory_space<vmem>>, vector<32x128xbf16>
    %c0_1 = arith.constant 0 : index
    %c0_2 = arith.constant 0 : index
    %1 = vector.load %arg3[%c0_1, %c0_2] : memref<128x128xbf16, #tpu.memory_space<vmem>>, vector<128x128xbf16>
    %cst = arith.constant dense<0.000000e+00> : vector<32x128xf32>
    %2 = tpu.matmul %0, %1, %cst {dimension_numbers = #tpu.dot_dimension_numbers<[1], [0], [0], [1], [0, 0, 1, 1], [], []>} : vector<32x128xbf16>, vector<128x128xbf16>, vector<32x128xf32> -> vector<32x128xf32>
    %c0_3 = arith.constant 0 : index
    %c0_4 = arith.constant 0 : index
    %3 = vector.load %arg4[%c0_3, %c0_4] : memref<1x128xf32, #tpu.memory_space<vmem>>, vector<1x128xf32>
    %4 = vector.broadcast %3 : vector<1x128xf32> to vector<32x128xf32>
    %5 = arith.addf %2, %4 : vector<32x128xf32>
    %cst_5 = arith.constant 0.000000e+00 : f32
    %6 = vector.broadcast %cst_5 : f32 to vector<32x128xf32>
    %7 = arith.cmpf oge, %5, %6 : vector<32x128xf32>
    %cst_6 = arith.constant 1.000000e-01 : f32
    %8 = vector.broadcast %cst_6 : f32 to vector<32x128xf32>
    %9 = arith.mulf %8, %5 : vector<32x128xf32>
    %10 = arith.select %7, %5, %9 : vector<32x128xi1>, vector<32x128xf32>
    %c0_7 = arith.constant 0 : index
    %c0_8 = arith.constant 0 : index
    %11 = vector.load %arg5[%c0_7, %c0_8] : memref<32x128xf32, #tpu.memory_space<vmem>>, vector<32x128xf32>
    tpu.vector_store %arg5[%c0_7, %c0_8], %10 {strides = array<i32>} : memref<32x128xf32, #tpu.memory_space<vmem>>, vector<32x128xf32>,
    return
  }
  func.func @transform_0(%arg0: i32, %arg1: i32) -> (i32, i32) {
    %c0_i32 = arith.constant 0 : i32
    %c0_i32_0 = arith.constant 0 : i32
    return %arg1, %c0_i32 : i32, i32
  }
  func.func @transform_1(%arg0: i32, %arg1: i32) -> (i32, i32) {
    %c0_i32 = arith.constant 0 : i32
    %c0_i32_0 = arith.constant 0 : i32
    return %c0_i32, %arg0 : i32, i32
  }
  func.func @transform_2(%arg0: i32, %arg1: i32) -> (i32, i32) {
    %c0_i32 = arith.constant 0 : i32
    %c0_i32_0 = arith.constant 0 : i32
    return %c0_i32, %arg0 : i32, i32
  }
  func.func @transform_3(%arg0: i32, %arg1: i32) -> (i32, i32) {
    %c0_i32 = arith.constant 0 : i32
    return %arg1, %arg0 : i32, i32
  }
}

</mosaic_0001>

<bundles_post_ra>
// kernel: tpu_custom_call.1
= control target key start
LH: loop header
LB: loop body
LE: loop exit
PB: predicated region body
PF: predicated region fallthrough
CT: control target
= control target key end

     0   :  { %8 = vsyncpa [#allocation3], 0  ;;  %s369_s0 = inlined_call_operand.hbm [shape: bf16[32,128], index: 0, kind: input, shape index: {}]   ;;  %s370_s1 = inlined_call_operand.hbm [shape: bf16[128,128], index: 1, kind: input, shape index: {}]   ;;  %s371_s2 = inlined_call_operand.vmem [shape: f32[1,128], index: 2, kind: input, shape index: {}]   ;;  %s372_s3 = inlined_call_operand.hbm [shape: f32[32,128], index: 3, kind: output, shape index: {}]  }
   0x1   :  { %9 = vsyncpa [#allocation6], 0 }
   0x2   :  { %10 = vsyncpa [#allocation4], 0  ;;  %s15_s14 = sshll.u32 %s369_s0, 4  ;;  %s330_s15 = smov [#allocation2]   ;;  %s16_s14 = int_to_ptr.hbm [resolvable:$true] %s15_s14 }
   0x3   :  { %s17_s16 = sshll.u32 %s330_s15, 4  ;;  %s28_s19 = sshll.u32 %s370_s1, 4  ;;  %s18_s16 = int_to_ptr.vmem [resolvable:$true] %s17_s16  ;;  %s29_s19 = int_to_ptr.hbm [resolvable:$true] %s28_s19 }
   0x4   :  { %s331_s20 = smov 64   ;;  %s332_s21 = smov 4  }
   0x5   :  { %23 = dma.hbm_to_vmem [thread:$0]  %s16_s14, 256, %s18_s16, [#allocation3], %s331_s20, %s331_s20, %s332_s21  }
   0x6   :  { %s333_s22 = smov [#allocation5]  }
   0x7   :  { %s30_s23 = sshll.u32 %s333_s22, 4  ;;  %s31_s23 = int_to_ptr.vmem [resolvable:$true] %s30_s23 }
   0x8   :  { %36 = dma.hbm_to_vmem [thread:$0]  %s29_s19, 1024, %s31_s23, [#allocation6], %s331_s20, %s331_s20, %s332_s21  }
   0x9   :  { %324 = dma.done.wait [#allocation3], 256  }
   0xa   :  { %325 = vsyncadd [#allocation3], 4294967040 }
   0xb   :  { %326 = dma.done.wait [#allocation6], 1024  }
   0xc   :  { %327 = vsyncadd [#allocation6], 4294966272  ;;  %v235_v0 = vld [vmem:[#allocation5 + $0x38] sm:$0xff]  ;;  %v234_v1 = vld [vmem:[#allocation5 + $0x30] sm:$0xff]  ;;  %s334_s24 = smov [#allocation7]   ;;  %s172_s27 = sshll.u32 %s372_s3, 4  ;;  %s173_s27 = int_to_ptr.hbm [resolvable:$true] %s172_s27 }
   0xd   :  { %131 = vmatpush.bf16.msra.mxu0 %v235_v0  ;;  %236 = vmatpush.bf16.msra.mxu1 %v235_v0  ;;  %v233_v2 = vld [vmem:[#allocation5 + $0x28] sm:$0xff]  ;;  %v232_v3 = vld [vmem:[#allocation5 + $0x20] sm:$0xff]  ;;  %v231_v4 = vld [vmem:[#allocation5 + $0x18] sm:$0xff]  ;;  %s170_s25 = sshll.u32 %s334_s24, 4  ;;  %s335_s28 = smov 128   ;;  %s171_s25 = int_to_ptr.vmem [resolvable:$true] %s170_s25 }
   0xe   :  { %v230_v5 = vld [vmem:[#allocation5 + $0x10] sm:$0xff]  ;;  %v229_v6 = vld [vmem:[#allocation5 + $0x8] sm:$0xff]  ;;  %v228_v7 = vld [vmem:[#allocation5] sm:$0xff]  ;;  %s336_s29 = smov 8  }
   0xf   :  { %v226_v8 = vld [vmem:[#allocation2] sm:$0xff]  ;;  %v227_v9 = vld [vmem:[#allocation2 + $0x8] sm:$0xff] }
  0x10   :  { %v251_v10 = vld [vmem:[%s371_s2] ss:$0 sm:$0xff] }
  0x11   :  { %132 = vmatpush.bf16.msra.mxu0 %v234_v1  ;;  %237 = vmatpush.bf16.msra.mxu1 %v234_v1 }
  0x15   :  { %133 = vmatpush.bf16.msra.mxu0 %v233_v2  ;;  %238 = vmatpush.bf16.msra.mxu1 %v233_v2 }
  0x19   :  { %134 = vmatpush.bf16.msra.mxu0 %v232_v3  ;;  %239 = vmatpush.bf16.msra.mxu1 %v232_v3 }
  0x1d   :  { %135 = vmatpush.bf16.msra.mxu0 %v231_v4  ;;  %240 = vmatpush.bf16.msra.mxu1 %v231_v4 }
  0x21   :  { %136 = vmatpush.bf16.msra.mxu0 %v230_v5  ;;  %241 = vmatpush.bf16.msra.mxu1 %v230_v5 }
  0x25   :  { %137 = vmatpush.bf16.msra.mxu0 %v229_v6  ;;  %242 = vmatpush.bf16.msra.mxu1 %v229_v6 }
  0x29   :  { %138 = vmatpush.bf16.msra.mxu0 %v228_v7  ;;  %243 = vmatpush.bf16.msra.mxu1 %v228_v7 }
  0x2c   :  { %139 = vmatmul.bf16.vlgmr.msra.gmra.mxu0 %v226_v8  ;;  %144 = vmatmul.bf16.vlgmr.msra.gmra.mxu1 %v227_v9 }
  0xa9   :  { %v140_v11 = vpop.f32.mrf.mxu0  ;;  %v145_v12 = vpop.f32.mrf.mxu1 }
  0xaa   :  { %v141_v13 = vadd.f32 %v251_v10, %v140_v11  ;;  %v146_v14 = vadd.f32 %v251_v10, %v145_v12 }
  0xac   :  { %vm150_vm0 = vcmp.ge.f32.partialorder %v141_v13, 0.0  ;;  %v154_v15 = vmul.f32 0.1, %v141_v13  ;;  %vm152_vm1 = vcmp.ge.f32.partialorder %v146_v14, 0.0  ;;  %v156_v16 = vmul.f32 0.1, %v146_v14 }
  0xae   :  { %v158_v17 = vsel %vm150_vm0, %v141_v13, %v154_v15  ;;  %v160_v18 = vsel %vm152_vm1, %v146_v14, %v156_v16 }
  0xaf   :  { %162 = vst [vmem:[#allocation7] sm:$0xff] %v158_v17 }
  0xb0   :  { %164 = vst [vmem:[#allocation7 + $0x10] sm:$0xff] %v160_v18 }
  0xb1   :  { %v142_v19 = vpop.f32.mrf.mxu0  ;;  %v147_v20 = vpop.f32.mrf.mxu1 }
  0xb2   :  { %v143_v21 = vadd.f32 %v251_v10, %v142_v19  ;;  %v148_v22 = vadd.f32 %v251_v10, %v147_v20 }
  0xb4   :  { %vm151_vm2 = vcmp.ge.f32.partialorder %v143_v21, 0.0  ;;  %v155_v23 = vmul.f32 0.1, %v143_v21  ;;  %vm153_vm3 = vcmp.ge.f32.partialorder %v148_v22, 0.0  ;;  %v157_v24 = vmul.f32 0.1, %v148_v22 }
  0xb6   :  { %v159_v25 = vsel %vm151_vm2, %v143_v21, %v155_v23  ;;  %v161_v26 = vsel %vm153_vm3, %v148_v22, %v157_v24 }
  0xb7   :  { %163 = vst [vmem:[#allocation7 + $0x8] sm:$0xff] %v159_v25 }
  0xb8   :  { %165 = vst [vmem:[#allocation7 + $0x18] sm:$0xff] %v161_v26 }
  0xb9   :  { %178 = dma.vmem_to_hbm [thread:$0]  %s171_s25, 512, %s173_s27, [#allocation4], %s335_s28, %s335_s28, %s336_s29  }
  0xba   :  { %328 = dma.done.wait [#allocation4], 512  }
  0xbb   :  { %329 = vsyncadd [#allocation4], 4294966784 }
  0xbc   :  { %183 = vsyncpa [#allocation3], 1 }
  0xbd   :  { %184 = vsyncpa [#allocation6], 1 }
  0xbe   :  { %185 = vsyncpa [#allocation4], 1 }

</bundles_post_ra>
